<compile_context>
chip_gen: v7x
topology: tpu7x:2x2x1
jax: 0.10.0
libtpu: 0.0.40
codegen_flags: <defaults>
</compile_context>

<pallas_src>
import functools

import jax
import jax.numpy as jnp
from jax.experimental import pallas as pl
from jax.experimental.pallas import tpu as pltpu

EPSILON = 1e-6
LANES = 128
SUBLANES = 8
MAX_BLOCK_BYTES = 2 * 1024 * 1024   # per-input block; ~8 MiB total double-buffered


def _round_up(x, m):
    return ((x + m - 1) // m) * m


def _kl_kernel(p_ref, q_ref, o_ref, acc_ref, *, tile_n, steps, n_rows):
    s = pl.program_id(0)          # megacore split ("parallel")
    k = pl.program_id(1)          # sequential reduction step ("arbitrary")

    @pl.when(k == 0)
    def _():
        acc_ref[...] = jnp.zeros_like(acc_ref)

    p = p_ref[...].astype(jnp.float32)
    q = q_ref[...].astype(jnp.float32)

    # Elementwise KL contribution (VPU + EUP); hidden under the HBM stream.
    contrib = p * jnp.log(p / (q + EPSILON))

    # Mask rows past the true batch size (edge tile / clamped overflow tile).
    # base_row uses the *unclamped* tile index, so a fully-out-of-range tile
    # contributes exactly zero even though its DMA re-reads a valid block.
    base_row = (s * steps + k) * tile_n
    row = jax.lax.broadcasted_iota(jnp.int32, contrib.shape, 0)
    contrib = jnp.where(base_row + row < n_rows, contrib, jnp.float32(0.0))

    # Cheap sublane reduction per step; cross-lane reduction only once at end.
    acc_ref[...] += jnp.sum(contrib, axis=0, keepdims=True)

    @pl.when(k == steps - 1)
    def _():
        o_ref[...] = jnp.full((SUBLANES, LANES), jnp.sum(acc_ref[...]),
                              jnp.float32)


def kl_loss(p, q, *, max_block_bytes=MAX_BLOCK_BYTES):
    """Pallas TPU implementation of KLLoss.forward(p, q)."""
    assert p.shape == q.shape and p.ndim == 2
    n, d = p.shape

    # Rows per block, sized against the lane-padded VMEM footprint of a block.
    # TODO(synk): D is not tiled (KL class/subtype dims are small in practice);
    # a D much larger than ~500K f32 elements per 8 rows would need a 2-D grid.
    d_pad = _round_up(d, LANES)
    rows_budget = max(
        SUBLANES, (max_block_bytes // (d_pad * 4)) // SUBLANES * SUBLANES)

    if n <= rows_budget:
        tile_n = n                         # single block; full-dim exemption
        total_tiles = 1
    else:
        tile_n = rows_budget               # multiple of 8
        total_tiles = pl.cdiv(n, tile_n)

    num_splits = 2 if total_tiles >= 2 else 1
    steps = pl.cdiv(total_tiles, num_splits)
    last_tile = total_tiles - 1

    kernel = functools.partial(_kl_kernel, tile_n=tile_n, steps=steps, n_rows=n)

    # Clamp so the overflow tile (odd tile count split across 2 cores) stays
    # in range; its rows are masked to zero inside the kernel.
    in_map = lambda s, k: (jnp.minimum(s * steps + k, last_tile), 0)

    partials = pl.pallas_call(
        kernel,
        out_shape=jax.ShapeDtypeStruct((num_splits * SUBLANES, LANES),
                                       jnp.float32),
        grid_spec=pltpu.PrefetchScalarGridSpec(
            num_scalar_prefetch=0,
            grid=(num_splits, steps),
            in_specs=[
                pl.BlockSpec((tile_n, d), in_map),
                pl.BlockSpec((tile_n, d), in_map),
            ],
            out_specs=pl.BlockSpec((SUBLANES, LANES), lambda s, k: (s, 0)),
            scratch_shapes=[pltpu.VMEM((1, d), jnp.float32)],
        ),
        compiler_params=pltpu.CompilerParams(
            dimension_semantics=("parallel", "arbitrary")),
    )(p, q)

    # One broadcast partial per split; sum them and divide by the true N.
    return jnp.sum(partials[::SUBLANES, 0]) / jnp.float32(n)


def kl_loss_ref(p, q):
    """Pure-JAX reference matching the PyTorch module."""
    log_frac = jnp.log(p / (q + EPSILON))
    return jnp.mean(jnp.sum(p * log_frac, axis=1))


if __name__ == "__main__":
    key = jax.random.PRNGKey(0)
    cases = [
        ((64, 16), None),     # typical batch x n_subtypes, single block
        ((37, 50), None),     # ragged dims, single (37, 50) block
        ((200, 24), 4096),    # tiny block budget -> multi-tile + 2-split path
    ]
    for shape, blk_bytes in cases:
        key, k1, k2 = jax.random.split(key, 3)
        p = jax.nn.softmax(jax.random.normal(k1, shape, jnp.float32), axis=1)
        q = jax.nn.softmax(jax.random.normal(k2, shape, jnp.float32), axis=1)

        kwargs = {} if blk_bytes is None else {"max_block_bytes": blk_bytes}
        out = kl_loss(p, q, **kwargs)
        jax.block_until_ready(out)

        ref = kl_loss_ref(p, q)
        assert jnp.allclose(out, ref, atol=1e-5, rtol=1e-5), (shape, out, ref)

    print("KERNEL_OK")
</pallas_src>

<mosaic_0001>
module attributes {stable_mosaic.version = 11 : i64} {
  func.func @_kl_kernel(%arg0: i32, %arg1: i32, %arg2: memref<64x16xf32, #tpu.memory_space<vmem>>, %arg3: memref<64x16xf32, #tpu.memory_space<vmem>>, %arg4: memref<8x128xf32, #tpu.memory_space<vmem>>, %arg5: memref<1x16xf32, #tpu.memory_space<vmem>>) attributes {dimension_semantics = [#tpu.dimension_semantics<parallel>, #tpu.dimension_semantics<arbitrary>], iteration_bounds = array<i64: 1, 1>, scalar_prefetch = 0 : i64, scratch_operands = 1 : i64, tpu.core_type = #tpu.core_type<tc>, window_params = [{transform_indices = @transform_0, window_bounds = array<i64: 64, 16>}, {transform_indices = @transform_1, window_bounds = array<i64: 64, 16>}, {transform_indices = @transform_2, window_bounds = array<i64: 8, 128>}]} {
    %c0_i32 = arith.constant 0 : i32
    %0 = arith.cmpi eq, %arg1, %c0_i32 : i32
    %1 = arith.extui %0 : i1 to i32
    %c0_i32_0 = arith.constant 0 : i32
    %2 = arith.cmpi ne, %1, %c0_i32_0 : i32
    scf.if %2 {
      %cst_13 = arith.constant 0.000000e+00 : f32
      %28 = vector.broadcast %cst_13 : f32 to vector<1x16xf32>
      %c0_14 = arith.constant 0 : index
      %c0_15 = arith.constant 0 : index
      %29 = vector.load %arg5[%c0_14, %c0_15] : memref<1x16xf32, #tpu.memory_space<vmem>>, vector<1x16xf32>
      tpu.vector_store %arg5[%c0_14, %c0_15], %28 {strides = array<i32>} : memref<1x16xf32, #tpu.memory_space<vmem>>, vector<1x16xf32>,
    } else {
    }
    %c0 = arith.constant 0 : index
    %c0_1 = arith.constant 0 : index
    %3 = vector.load %arg2[%c0, %c0_1] : memref<64x16xf32, #tpu.memory_space<vmem>>, vector<64x16xf32>
    %c0_2 = arith.constant 0 : index
    %c0_3 = arith.constant 0 : index
    %4 = vector.load %arg3[%c0_2, %c0_3] : memref<64x16xf32, #tpu.memory_space<vmem>>, vector<64x16xf32>
    %cst = arith.constant 9.99999997E-7 : f32
    %5 = vector.broadcast %cst : f32 to vector<64x16xf32>
    %6 = arith.addf %4, %5 : vector<64x16xf32>
    %7 = arith.divf %3, %6 : vector<64x16xf32>
    %8 = math.log %7 : vector<64x16xf32>
    %9 = arith.mulf %3, %8 : vector<64x16xf32>
    %c1_i32 = arith.constant 1 : i32
    %10 = arith.muli %arg0, %c1_i32 : i32
    %11 = arith.addi %10, %arg1 : i32
    %c64_i32 = arith.constant 64 : i32
    %12 = arith.muli %11, %c64_i32 : i32
    %13 = tpu.iota {dimensions = array<i32: 0>} : vector<64x16xi32>
    %14 = vector.broadcast %12 : i32 to vector<64x16xi32>
    %15 = arith.addi %14, %13 : vector<64x16xi32>
    %c64_i32_4 = arith.constant 64 : i32
    %16 = vector.broadcast %c64_i32_4 : i32 to vector<64x16xi32>
    %17 = arith.cmpi slt, %15, %16 : vector<64x16xi32>
    %cst_5 = arith.constant 0.000000e+00 : f32
    %18 = vector.broadcast %cst_5 : f32 to vector<64x16xf32>
    %19 = arith.select %17, %9, %18 : vector<64x16xi1>, vector<64x16xf32>
    %c0_6 = arith.constant 0 : index
    %c0_7 = arith.constant 0 : index
    %20 = vector.load %arg5[%c0_6, %c0_7] : memref<1x16xf32, #tpu.memory_space<vmem>>, vector<1x16xf32>
    %cst_8 = arith.constant dense<0.000000e+00> : vector<16xf32>
    %21 = vector.multi_reduction <add>, %19, %cst_8 [0] : vector<64x16xf32> to vector<16xf32>
    %22 = vector.shape_cast %21 : vector<16xf32> to vector<1x16xf32>
    %23 = arith.addf %20, %22 : vector<1x16xf32>
    %c0_9 = arith.constant 0 : index
    %c0_10 = arith.constant 0 : index
    %24 = vector.load %arg5[%c0_9, %c0_10] : memref<1x16xf32, #tpu.memory_space<vmem>>, vector<1x16xf32>
    tpu.vector_store %arg5[%c0_9, %c0_10], %23 {strides = array<i32>} : memref<1x16xf32, #tpu.memory_space<vmem>>, vector<1x16xf32>,
    %c0_i32_11 = arith.constant 0 : i32
    %25 = arith.cmpi eq, %arg1, %c0_i32_11 : i32
    %26 = arith.extui %25 : i1 to i32
    %c0_i32_12 = arith.constant 0 : i32
    %27 = arith.cmpi ne, %26, %c0_i32_12 : i32
    scf.if %27 {
      %c0_13 = arith.constant 0 : index
      %c0_14 = arith.constant 0 : index
      %28 = vector.load %arg5[%c0_13, %c0_14] : memref<1x16xf32, #tpu.memory_space<vmem>>, vector<1x16xf32>
      %29 = vector.shape_cast %28 : vector<1x16xf32> to vector<1x1x16xf32>
      %cst_15 = arith.constant dense<0.000000e+00> : vector<1xf32>
      %30 = vector.multi_reduction <add>, %29, %cst_15 [1, 2] : vector<1x1x16xf32> to vector<1xf32>
      %31 = vector.shape_cast %30 : vector<1xf32> to vector<1x1x1xf32>
      %32 = vector.extract %31[0, 0, 0] : f32 from vector<1x1x1xf32>
      %33 = vector.broadcast %32 : f32 to vector<8x128xf32>
      %c0_16 = arith.constant 0 : index
      %c0_17 = arith.constant 0 : index
      %34 = vector.load %arg4[%c0_16, %c0_17] : memref<8x128xf32, #tpu.memory_space<vmem>>, vector<8x128xf32>
      tpu.vector_store %arg4[%c0_16, %c0_17], %33 {strides = array<i32>} : memref<8x128xf32, #tpu.memory_space<vmem>>, vector<8x128xf32>,
    } else {
    }
    return
  }
  func.func @transform_0(%arg0: i32, %arg1: i32) -> (i32, i32) {
    %c1_i32 = arith.constant 1 : i32
    %0 = arith.muli %arg0, %c1_i32 : i32
    %1 = arith.addi %0, %arg1 : i32
    %c0_i32 = arith.constant 0 : i32
    %2 = arith.minsi %1, %c0_i32 : i32
    %c0_i32_0 = arith.constant 0 : i32
    %c0_i32_1 = arith.constant 0 : i32
    return %2, %c0_i32_0 : i32, i32
  }
  func.func @transform_1(%arg0: i32, %arg1: i32) -> (i32, i32) {
    %c1_i32 = arith.constant 1 : i32
    %0 = arith.muli %arg0, %c1_i32 : i32
    %1 = arith.addi %0, %arg1 : i32
    %c0_i32 = arith.constant 0 : i32
    %2 = arith.minsi %1, %c0_i32 : i32
    %c0_i32_0 = arith.constant 0 : i32
    %c0_i32_1 = arith.constant 0 : i32
    return %2, %c0_i32_0 : i32, i32
  }
  func.func @transform_2(%arg0: i32, %arg1: i32) -> (i32, i32) {
    %c0_i32 = arith.constant 0 : i32
    %c0_i32_0 = arith.constant 0 : i32
    return %arg0, %c0_i32 : i32, i32
  }
}

</mosaic_0001>

<bundles_post_ra>
// kernel: tpu_custom_call.1
= control target key start
LH: loop header
LB: loop body
LE: loop exit
PB: predicated region body
PF: predicated region fallthrough
CT: control target
= control target key end

     0   :  { %vm80_vm0 = vcmask 122880   ;;  %v310_v0 = vmov 0.0   ;;  %s398_s0 = inlined_call_operand.vmem [shape: f32[64,16], index: 0, kind: input, shape index: {}]   ;;  %s399_s1 = inlined_call_operand.vmem [shape: f32[64,16], index: 1, kind: input, shape index: {}]   ;;  %s400_s2 = inlined_call_operand.hbm [shape: f32[8,128], index: 2, kind: output, shape index: {}]  }
   0x1   :  { %81 = vst.msk [vmem:[#allocation2] sm:$0x1] %vm80_vm0, %v310_v0  ;;  %v90_v1 = vld [vmem:[%s399_s1] sm:$0xff]  ;;  %v91_v2 = vld [vmem:[%s399_s1 + $0x8] sm:$0xff]  ;;  %v92_v3 = vld [vmem:[%s399_s1 + $0x10] sm:$0xff] }
   0x2   :  { %v93_v4 = vld [vmem:[%s399_s1 + $0x18] sm:$0xff]  ;;  %v98_v5 = vadd.f32 1e-06, %v90_v1  ;;  %v94_v6 = vld [vmem:[%s399_s1 + $0x20] sm:$0xff]  ;;  %v95_v7 = vld [vmem:[%s399_s1 + $0x28] sm:$0xff] }
   0x3   :  { %v96_v8 = vld [vmem:[%s399_s1 + $0x30] sm:$0xff]  ;;  %v99_v9 = vadd.f32 1e-06, %v91_v2  ;;  %v97_v10 = vld [vmem:[%s399_s1 + $0x38] sm:$0xff]  ;;  %v100_v11 = vadd.f32 1e-06, %v92_v3 }
   0x4   :  { %v101_v12 = vadd.f32 1e-06, %v93_v4  ;;  %254 = vrcp.f32 %v98_v5  ;;  %v102_v13 = vadd.f32 1e-06, %v94_v6  ;;  %v103_v14 = vadd.f32 1e-06, %v95_v7 }
   0x5   :  { %256 = vrcp.f32 %v99_v9  ;;  %v104_v15 = vadd.f32 1e-06, %v96_v8 }
   0x6   :  { %258 = vrcp.f32 %v100_v11 }
   0x7   :  { %7 = vsyncpa [#allocation4], 0  ;;  %v105_v16 = vadd.f32 1e-06, %v97_v10  ;;  %260 = vrcp.f32 %v101_v12  ;;  %v82_v17 = vld [vmem:[%s398_s0] sm:$0xff]  ;;  %v83_v18 = vld [vmem:[%s398_s0 + $0x8] sm:$0xff] }
   0x8   :  { %262 = vrcp.f32 %v102_v13  ;;  %v84_v20 = vld [vmem:[%s398_s0 + $0x10] sm:$0xff]  ;;  %v85_v22 = vld [vmem:[%s398_s0 + $0x18] sm:$0xff]  ;;  %v86_v25 = vld [vmem:[%s398_s0 + $0x20] sm:$0xff]  ;;  %vm183_vm1 = vcmask 130048  }
   0x9   :  { %264 = vrcp.f32 %v103_v14  ;;  %v87_v28 = vld [vmem:[%s398_s0 + $0x28] sm:$0xff]  ;;  %v88_v31 = vld [vmem:[%s398_s0 + $0x30] sm:$0xff]  ;;  %v89_v34 = vld [vmem:[%s398_s0 + $0x38] sm:$0xff]  ;;  %s311_s0 = smov [#allocation3]  }
   0xa   :  { %266 = vrcp.f32 %v104_v15  ;;  %s230_s12 = sshll.u32 %s311_s0, 4  ;;  %s231_s12 = int_to_ptr.vmem [resolvable:$true] %s230_s12 }
   0xb   :  { %268 = vrcp.f32 %v105_v16  ;;  %s286_s14 = scalar_lea.vmem %s231_s12, 128  ;;  %p291_p1 = scmp.lt.s32.totalorder %s231_s12, %s231_s12 }
   0xc   :  { %p287_p0 = scmp.ne.s32.totalorder %s231_s12, %s286_s14  ;;  %p292_p2 = scmp.lt.s32.totalorder %s286_s14, %s286_s14 }
   0xe   :  { %v255_v19 = vpop.eup %254  ;;  %p293_p3 = por %p292_p2, %p291_p1 }
   0xf   :  { %v257_v21 = vpop.eup %256  ;;  %v107_v23 = vmul.f32 %v255_v19, %v82_v17 }
  0x10   :  { %v259_v24 = vpop.eup %258  ;;  %v109_v26 = vmul.f32 %v257_v21, %v83_v18  ;;  %v182_v21 = vld [vmem:[#allocation2] sm:$0x1]  ;;  %p294_p4 = pnand %p293_p3, %p287_p0 }
  0x11   :  { %v261_v27 = vpop.eup %260  ;;  %v111_v29 = vmul.f32 %v259_v24, %v84_v20  ;;  %270 = vlog2.f32 %v107_v23 }
  0x12   :  { %v263_v30 = vpop.eup %262  ;;  %v113_v32 = vmul.f32 %v261_v27, %v85_v22  ;;  %272 = vlog2.f32 %v109_v26 }
  0x13   :  { %v265_v33 = vpop.eup %264  ;;  %v115_v35 = vmul.f32 %v263_v30, %v86_v25  ;;  %274 = vlog2.f32 %v111_v29 }
  0x14   :  { %v267_v36 = vpop.eup %266  ;;  %v117_v37 = vmul.f32 %v265_v33, %v87_v28  ;;  %276 = vlog2.f32 %v113_v32 }
  0x15   :  { %v269_v38 = vpop.eup %268  ;;  %v119_v39 = vmul.f32 %v267_v36, %v88_v31  ;;  %278 = vlog2.f32 %v115_v35 }
  0x16   :  { %v121_v40 = vmul.f32 %v269_v38, %v89_v34  ;;  %280 = vlog2.f32 %v117_v37 }
  0x17   :  { %282 = vlog2.f32 %v119_v39 }
  0x18   :  { %284 = vlog2.f32 %v121_v40 }
  0x1b   :  { %v271_v41 = vpop.eup %270 }
  0x1c   :  { %v273_v42 = vpop.eup %272  ;;  %v123_v43 = vmul.f32 0.6931472, %v271_v41 }
  0x1d   :  { %v275_v44 = vpop.eup %274  ;;  %v125_v45 = vmul.f32 0.6931472, %v273_v42 }
  0x1e   :  { %v277_v46 = vpop.eup %276  ;;  %v127_v47 = vmul.f32 0.6931472, %v275_v44  ;;  %v138_v48 = vmul.f32 %v123_v43, %v82_v17 }
  0x1f   :  { %v279_v49 = vpop.eup %278  ;;  %v129_v50 = vmul.f32 0.6931472, %v277_v46  ;;  %v139_v51 = vmul.f32 %v125_v45, %v83_v18 }
  0x20   :  { %v281_v52 = vpop.eup %280  ;;  %v131_v53 = vmul.f32 0.6931472, %v279_v49  ;;  %v140_v54 = vmul.f32 %v127_v47, %v84_v20  ;;  %v184_v55 = vsel %vm183_vm1, %v138_v48, 0.0 }
  0x21   :  { %v283_v56 = vpop.eup %282  ;;  %v133_v57 = vmul.f32 0.6931472, %v281_v52  ;;  %v141_v58 = vmul.f32 %v129_v50, %v85_v22  ;;  %v185_v59 = vsel %vm183_vm1, %v139_v51, 0.0 }
  0x22   :  { %v285_v60 = vpop.eup %284  ;;  %v135_v61 = vmul.f32 0.6931472, %v283_v56  ;;  %v142_v62 = vmul.f32 %v131_v53, %v86_v25  ;;  %v186_v63 = vadd.f32 %v185_v59, %v184_v55  ;;  %v187_v0 = vsel %vm183_vm1, %v140_v54, 0.0 }
  0x23   :  { %v137_v1 = vmul.f32 0.6931472, %v285_v60  ;;  %v143_v2 = vmul.f32 %v133_v57, %v87_v28  ;;  %v189_v3 = vsel %vm183_vm1, %v141_v58, 0.0 }
  0x24   :  { %v188_v4 = vadd.f32 %v187_v0, %v186_v63  ;;  %v144_v5 = vmul.f32 %v135_v61, %v88_v31  ;;  %v191_v6 = vsel %vm183_vm1, %v142_v62, 0.0 }
  0x25   :  { %v145_v8 = vmul.f32 %v137_v1, %v89_v34  ;;  %v193_v9 = vsel %vm183_vm1, %v143_v2, 0.0 }
  0x26   :  { %v190_v7 = vadd.f32 %v189_v3, %v188_v4  ;;  %v195_v11 = vsel %vm183_vm1, %v144_v5, 0.0 }
  0x27   :  { %v197_v13 = vsel %vm183_vm1, %v145_v8, 0.0 }
  0x28   :  { %v192_v10 = vadd.f32 %v191_v6, %v190_v7 }
  0x2a   :  { %v194_v12 = vadd.f32 %v193_v9, %v192_v10 }
  0x2c   :  { %v196_v14 = vadd.f32 %v195_v11, %v194_v12 }
  0x2e   :  { %v198_v15 = vadd.f32 %v197_v13, %v196_v14 }
  0x30   :  { %v199_v16 = vrot.slane %v198_v15, 4 }
  0x32   :  { %v200_v17 = vadd.f32 %v199_v16, %v198_v15 }
  0x34   :  { %v201_v18 = vrot.slane %v200_v17, 2 }
  0x36   :  { %v202_v19 = vadd.f32 %v201_v18, %v200_v17 }
  0x38   :  { %v203_v20 = vrot.slane %v202_v19, 1 }
  0x3a   :  { %v204_v22 = vadd.f32 %v203_v20, %v202_v19 }
  0x3c   :  { %v205_v23 = vadd.f32 %v204_v22, %v182_v21 }
  0x3e   :  { %207 = vst.msk [vmem:[#allocation2] sm:$0x1] %vm80_vm0, %v205_v23 }
  0x45   :  { %v211_v24 = vld [vmem:[#allocation2] sm:$0x1] }
  0x46   :  { %v212_v25 = vsel %vm80_vm0, %v211_v24, 0.0 }
  0x47   :  { %213 = vadd.xlane.f32.xlu0 %v212_v25 }
  0xd4   :  { %v214_v26 = vpop.xlane.xlu0 %213 }
  0xd5   :  { %v215_v27 = vrot.slane %v214_v26, 4 }
  0xd7   :  { %v216_v28 = vadd.f32 %v215_v27, %v214_v26 }
  0xd9   :  { %v217_v29 = vrot.slane %v216_v28, 2 }
  0xdb   :  { %v218_v30 = vadd.f32 %v217_v29, %v216_v28 }
  0xdd   :  { %v219_v31 = vrot.slane %v218_v30, 1 }
  0xdf   :  { %v220_v32 = vadd.f32 %v219_v31, %v218_v30 }
  0xe1   :  { %250 = vpush %v220_v32 }
 0x112   :  { %s251_s13 = spop %250 }
 0x113   :  { %v222_v33 = vstv %s251_s13 }
 0x114   :  { %223 = vst [vmem:[#allocation3] sm:$0xff] %v222_v33 }
 0x115   :  { %297 = shalt.err (!%p294_p4)
}
 0x116   :  { %s298_s17 = scalar_lea.hbm %s400_s2, 128 }
 0x117   :  { %p299_p5 = scmp.ne.s32.totalorder %s400_s2, %s298_s17  ;;  %p302_p6 = scmp.lt.u32.totalorder %s298_s17, %s400_s2 }
 0x119   :  { %p304_p7 = pnand %p302_p6, %p299_p5 }
 0x11b   :  { %307 = shalt.err (!%p304_p7)
}
 0x11c   :  { %233 = dma.vmem_to_hbm [thread:$0]  %s231_s12, 128, %s400_s2, [#allocation4]  }
 0x11d   :  { %308 = dma.done.wait [#allocation4], 128  }
 0x11e   :  { %309 = vsyncadd [#allocation4], 4294967168 }
 0x11f   :  { %237 = vsyncpa [#allocation4], 1 }

</bundles_post_ra>
